<compile_context>
chip_gen: v7x
topology: tpu7x:2x2x1
jax: 0.10.0
libtpu: 0.0.40
codegen_flags: <defaults>
</compile_context>

<pallas_src>
import jax
import jax.numpy as jnp
from jax.experimental import pallas as pl
from jax.experimental.pallas import tpu as pltpu

EPS = 1e-10


def l2norm_kernel(x_ref, o_ref):
    # x_ref / o_ref: (TILE_B, D) tiles in VMEM
    x = x_ref[...]
    xf = x.astype(jnp.float32)
    sq_sum = jnp.sum(xf * xf, axis=1, keepdims=True)      # (TILE_B, 1), f32
    # rsqrt lowers to the EUP slot; broadcast-multiply is far cheaper than a
    # full-tile divide, so compute stays hidden under the DMA pipeline.
    inv = jax.lax.rsqrt(sq_sum + EPS)
    # Final multiply in the input dtype (halves vreg pressure for bf16 inputs).
    o_ref[...] = (x * inv.astype(x.dtype)).astype(o_ref.dtype)


def _vmem_limit_bytes() -> int:
    """Generation-aware scoped-VMEM limit (stay well below physical VMEM)."""
    kind = ""
    try:
        kind = jax.devices()[0].device_kind.lower()
    except Exception:
        pass
    if "v7" in kind:
        # v7x: 64 MiB physical VMEM per TensorCore -> keep headroom.
        return 48 * 1024 * 1024
    if "v5 lite" in kind or "v5e" in kind:
        # v5e: 128 MiB physical, default scoped limit only 16 MiB -> raise it.
        return 64 * 1024 * 1024
    # v6e / default: 128 MiB physical.
    return 96 * 1024 * 1024


def _pick_tile_b(B: int, D: int, itemsize: int, buffer_budget_bytes: int) -> int:
    """Pick the largest row tile that fits the double-buffered VMEM budget."""
    # Minimum sublane tile: 8 (f32), 16 (bf16), 32 (int8).
    min_sub = max(8, 32 // itemsize)
    # 4 VMEM buffers: input + output, each double-buffered by the pipeline.
    max_rows = buffer_budget_bytes // max(1, 4 * D * itemsize)
    tile_b = min(B, max_rows, 1024)          # perf plateaus by ~1024 rows
    tile_b = max(min_sub, (tile_b // min_sub) * min_sub)
    return tile_b


def l2norm(x: jax.Array, tile_b: int | None = None) -> jax.Array:
    B, D = x.shape
    itemsize = jnp.dtype(x.dtype).itemsize
    vmem_limit = _vmem_limit_bytes()
    if tile_b is None:
        tile_b = _pick_tile_b(B, D, itemsize, int(0.75 * vmem_limit))
    # TODO(synk): if a single row block (tile_b x D) ever exceeds the VMEM
    # budget (very large D, esp. on v7x), add a D-axis "arbitrary" grid dim
    # with an accumulator + second normalize pass. Not needed for typical D.

    grid_b = pl.cdiv(B, tile_b)  # ragged tails handled by block padding

    return pl.pallas_call(
        l2norm_kernel,
        out_shape=jax.ShapeDtypeStruct((B, D), x.dtype),
        grid_spec=pltpu.PrefetchScalarGridSpec(
            num_scalar_prefetch=0,
            grid=(grid_b,),
            in_specs=[pl.BlockSpec((tile_b, D), lambda i: (i, 0))],
            out_specs=pl.BlockSpec((tile_b, D), lambda i: (i, 0)),
        ),
        compiler_params=pltpu.CompilerParams(
            dimension_semantics=("parallel",),   # shards rows across TCs on v7x
            vmem_limit_bytes=vmem_limit,
        ),
    )(x)


def l2norm_ref(x: jax.Array) -> jax.Array:
    norm = jnp.sqrt(jnp.sum(x.astype(jnp.float32) ** 2, axis=1) + EPS)
    return (x.astype(jnp.float32) / norm[:, None]).astype(x.dtype)


if __name__ == "__main__":
    key = jax.random.PRNGKey(0)

    # Small but lane-dense shape consistent with the module's (batch, features) use.
    B, D = 16, 128
    x = jax.random.normal(key, (B, D), dtype=jnp.float32)
    out = l2norm(x)
    jax.block_until_ready(out)
    ref = l2norm_ref(x)
    assert out.shape == x.shape and out.dtype == x.dtype
    assert jnp.allclose(out, ref, atol=1e-6, rtol=1e-6), "mismatch vs reference (f32)"

    # Ragged batch (tile does not divide B) exercises the cdiv tail handling.
    x2 = jax.random.normal(jax.random.PRNGKey(1), (12, 256), dtype=jnp.float32)
    out2 = l2norm(x2, tile_b=8)
    jax.block_until_ready(out2)
    ref2 = l2norm_ref(x2)
    assert jnp.allclose(out2, ref2, atol=1e-6, rtol=1e-6), "mismatch vs reference (ragged)"

    print("KERNEL_OK")
</pallas_src>

<mosaic_0001>
module attributes {stable_mosaic.version = 11 : i64} {
  func.func @l2norm_kernel(%arg0: i32, %arg1: memref<16x128xf32, #tpu.memory_space<vmem>>, %arg2: memref<16x128xf32, #tpu.memory_space<vmem>>) attributes {dimension_semantics = [#tpu.dimension_semantics<parallel>], iteration_bounds = array<i64: 1>, scalar_prefetch = 0 : i64, scratch_operands = 0 : i64, tpu.core_type = #tpu.core_type<tc>, window_params = [{transform_indices = @transform_0, window_bounds = array<i64: 16, 128>}, {transform_indices = @transform_1, window_bounds = array<i64: 16, 128>}]} {
    %c0 = arith.constant 0 : index
    %c0_0 = arith.constant 0 : index
    %0 = vector.load %arg1[%c0, %c0_0] : memref<16x128xf32, #tpu.memory_space<vmem>>, vector<16x128xf32>
    %1 = arith.mulf %0, %0 : vector<16x128xf32>
    %cst = arith.constant dense<0.000000e+00> : vector<16xf32>
    %2 = vector.multi_reduction <add>, %1, %cst [1] : vector<16x128xf32> to vector<16xf32>
    %3 = vector.shape_cast %2 : vector<16xf32> to vector<16x1xf32>
    %cst_1 = arith.constant 1.000000e-10 : f32
    %4 = vector.broadcast %cst_1 : f32 to vector<16x1xf32>
    %5 = arith.addf %3, %4 : vector<16x1xf32>
    %6 = math.rsqrt %5 : vector<16x1xf32>
    %7 = vector.broadcast %6 : vector<16x1xf32> to vector<16x128xf32>
    %8 = arith.mulf %0, %7 : vector<16x128xf32>
    %c0_2 = arith.constant 0 : index
    %c0_3 = arith.constant 0 : index
    %9 = vector.load %arg2[%c0_2, %c0_3] : memref<16x128xf32, #tpu.memory_space<vmem>>, vector<16x128xf32>
    tpu.vector_store %arg2[%c0_2, %c0_3], %8 {strides = array<i32>} : memref<16x128xf32, #tpu.memory_space<vmem>>, vector<16x128xf32>,
    return
  }
  func.func @transform_0(%arg0: i32) -> (i32, i32) {
    %c0_i32 = arith.constant 0 : i32
    %c0_i32_0 = arith.constant 0 : i32
    return %arg0, %c0_i32 : i32, i32
  }
  func.func @transform_1(%arg0: i32) -> (i32, i32) {
    %c0_i32 = arith.constant 0 : i32
    %c0_i32_0 = arith.constant 0 : i32
    return %arg0, %c0_i32 : i32, i32
  }
}

</mosaic_0001>

<bundles_post_ra>
// kernel: tpu_custom_call.1
= control target key start
LH: loop header
LB: loop body
LE: loop exit
PB: predicated region body
PF: predicated region fallthrough
CT: control target
= control target key end

     0   :  { %6 = vsyncpa [#allocation3], 0  ;;  %s156_s0 = inlined_call_operand.hbm [shape: f32[16,128], index: 0, kind: input, shape index: {}]   ;;  %s157_s1 = inlined_call_operand.hbm [shape: f32[16,128], index: 1, kind: output, shape index: {}]  }
   0x1   :  { %7 = vsyncpa [#allocation4], 0  ;;  %s112_s6 = smov [#allocation2]   ;;  %s64_s10 = scalar_lea.hbm %s156_s0, 256 }
   0x2   :  { %s13_s7 = sshll.u32 %s112_s6, 4  ;;  %p65_p0 = scmp.ne.s32.totalorder %s156_s0, %s64_s10  ;;  %s14_s7 = int_to_ptr.vmem [resolvable:$true] %s13_s7 }
   0x3   :  { %p68_p1 = scmp.lt.u32.totalorder %s64_s10, %s156_s0 }
   0x5   :  { %p70_p2 = pnand %p68_p1, %p65_p0 }
   0x7   :  { %73 = shalt.err (!%p70_p2)
}
   0x8   :  { %s74_s15 = scalar_lea.vmem %s14_s7, 256  ;;  %p79_p4 = scmp.lt.s32.totalorder %s14_s7, %s14_s7 }
   0x9   :  { %p75_p3 = scmp.ne.s32.totalorder %s14_s7, %s74_s15  ;;  %p80_p5 = scmp.lt.s32.totalorder %s74_s15, %s74_s15 }
   0xb   :  { %p81_p6 = por %p80_p5, %p79_p4 }
   0xd   :  { %p82_p7 = pnand %p81_p6, %p75_p3 }
   0xf   :  { %85 = shalt.err (!%p82_p7)
}
  0x10   :  { %s113_s16 = smov 128   ;;  %s114_s17 = smov 8  }
  0x11   :  { %19 = dma.hbm_to_vmem [thread:$0]  %s156_s0, 256, %s14_s7, [#allocation3], %s113_s16, %s113_s16, %s114_s17  }
  0x12   :  { %108 = dma.done.wait [#allocation3], 256  }
  0x13   :  { %109 = vsyncadd [#allocation3], 4294967040  ;;  %v23_v0 = vld [vmem:[#allocation2] sm:$0xff]  ;;  %v24_v1 = vld [vmem:[#allocation2 + $0x8] sm:$0xff]  ;;  %s115_s20 = smov [#allocation5]  }
  0x14   :  { %v25_v2 = vmul.f32 %v23_v0, %v23_v0  ;;  %v26_v3 = vmul.f32 %v24_v1, %v24_v1  ;;  %s44_s21 = sshll.u32 %s115_s20, 4  ;;  %s45_s21 = int_to_ptr.vmem [resolvable:$true] %s44_s21 }
  0x15   :  { %s86_s0 = scalar_lea.vmem %s45_s21, 256  ;;  %p91_p9 = scmp.lt.s32.totalorder %s45_s21, %s45_s21 }
  0x16   :  { %27 = vadd.xlane.f32.xlu0 %v25_v2  ;;  %p87_p8 = scmp.ne.s32.totalorder %s45_s21, %s86_s0  ;;  %p92_p10 = scmp.lt.s32.totalorder %s86_s0, %s86_s0 }
  0x18   :  { %p93_p11 = por %p92_p10, %p91_p9 }
  0x1a   :  { %29 = vadd.xlane.f32.xlu0 %v26_v3  ;;  %p94_p12 = pnand %p93_p11, %p87_p8 }
  0xa3   :  { %v28_v4 = vpop.xlane.xlu0 %27 }
  0xa4   :  { %v31_v5 = vadd.f32 1e-10, %v28_v4 }
  0xa6   :  { %60 = vrsqrt.f32 %v31_v5 }
  0xa7   :  { %v30_v6 = vpop.xlane.xlu0 %29 }
  0xa8   :  { %v32_v7 = vadd.f32 1e-10, %v30_v6 }
  0xaa   :  { %62 = vrsqrt.f32 %v32_v7 }
  0xb0   :  { %v61_v8 = vpop.eup %60 }
  0xb1   :  { %v35_v9 = vmul.f32 %v61_v8, %v23_v0 }
  0xb3   :  { %37 = vst [vmem:[#allocation5] sm:$0xff] %v35_v9 }
  0xb4   :  { %v63_v10 = vpop.eup %62 }
  0xb5   :  { %v36_v11 = vmul.f32 %v63_v10, %v24_v1 }
  0xb7   :  { %38 = vst [vmem:[#allocation5 + $0x8] sm:$0xff] %v36_v11 }
  0xb8   :  { %97 = shalt.err (!%p94_p12)
}
  0xb9   :  { %s98_s24 = scalar_lea.hbm %s157_s1, 256 }
  0xba   :  { %p99_p13 = scmp.ne.s32.totalorder %s157_s1, %s98_s24  ;;  %p102_p0 = scmp.lt.u32.totalorder %s98_s24, %s157_s1 }
  0xbc   :  { %p104_p1 = pnand %p102_p0, %p99_p13 }
  0xbe   :  { %107 = shalt.err (!%p104_p1)
}
  0xbf   :  { %50 = dma.vmem_to_hbm [thread:$0]  %s45_s21, 256, %s157_s1, [#allocation4], %s113_s16, %s113_s16, %s114_s17  }
  0xc0   :  { %110 = dma.done.wait [#allocation4], 256  }
  0xc1   :  { %111 = vsyncadd [#allocation4], 4294967040 }
  0xc2   :  { %54 = vsyncpa [#allocation3], 1 }
  0xc3   :  { %55 = vsyncpa [#allocation4], 1 }

</bundles_post_ra>
